<compile_context>
chip_gen: v7x
topology: tpu7x:2x2x1
jax: 0.10.0
libtpu: 0.0.40
codegen_flags: <defaults>
</compile_context>

<pallas_src>
import jax
import jax.numpy as jnp
from jax.experimental import pallas as pl
from jax.experimental.pallas import tpu as pltpu

NEG_INF = -1e30  # bias for padded output lanes -> exp() underflows to 0


def actor_kernel(x_ref, w1_ref, b1_ref, w2_ref, b2_ref, w3_ref, b3_ref, o_ref):
    # Layer 1: bf16 MXU matmul, f32 accumulate, bias + tanh in f32 (VPU/EUP).
    h = jnp.tanh(
        jnp.dot(x_ref[...], w1_ref[...], preferred_element_type=jnp.float32)
        + b1_ref[...]
    )
    # Layer 2.
    h = jnp.tanh(
        jnp.dot(h.astype(jnp.bfloat16), w2_ref[...],
                preferred_element_type=jnp.float32)
        + b2_ref[...]
    )
    # Output layer (lane-dense padded logits).
    logits = (
        jnp.dot(h.astype(jnp.bfloat16), w3_ref[...],
                preferred_element_type=jnp.float32)
        + b3_ref[...]
    )
    # Numerically stable softmax over the last (padded) axis. Padded columns
    # carry bias NEG_INF, so they contribute exactly 0 to the denominator.
    m = jnp.max(logits, axis=-1, keepdims=True)
    p = jnp.exp(logits - m)
    o_ref[...] = (p / jnp.sum(p, axis=-1, keepdims=True)).astype(o_ref.dtype)


def _round_up(n, m):
    return (n + m - 1) // m * m


def actor_forward(x, params, *, block_b=512):
    """x: (B, input_size) f32. params: dict of w1,b1,w2,b2,w3,b3."""
    w1, b1 = params["w1"], params["b1"]
    w2, b2 = params["w2"], params["b2"]
    w3, b3 = params["w3"], params["b3"]

    B, in_size = x.shape
    hidden = w1.shape[1]
    out_size = w3.shape[1]

    # Lane-dense output: pad output features to a multiple of 128.
    out_p = _round_up(out_size, 128)
    w3_p = jnp.zeros((hidden, out_p), jnp.float32).at[:, :out_size].set(w3)
    b3_p = jnp.full((1, out_p), NEG_INF, jnp.float32).at[:, :out_size].set(b3)

    # Batch tiling: tile size multiple of 8; pad the tail tile (sliced away).
    tb = min(block_b, _round_up(B, 8))
    b_pad = _round_up(B, tb)
    x_p = x if b_pad == B else jnp.pad(x, ((0, b_pad - B), (0, 0)))

    # bf16 MXU operands; biases stay f32.
    x_bf = x_p.astype(jnp.bfloat16)
    w1_bf = w1.astype(jnp.bfloat16)
    w2_bf = w2.astype(jnp.bfloat16)
    w3_bf = w3_p.astype(jnp.bfloat16)
    b1_f = b1.astype(jnp.float32)
    b2_f = b2.astype(jnp.float32)

    grid = (b_pad // tb,)
    const = lambda shape: pl.BlockSpec(shape, lambda i: (0, 0))  # VMEM-resident

    out = pl.pallas_call(
        actor_kernel,
        out_shape=jax.ShapeDtypeStruct((b_pad, out_p), jnp.float32),
        grid=grid,
        in_specs=[
            pl.BlockSpec((tb, in_size), lambda i: (i, 0)),  # x: streamed tiles
            const((in_size, hidden)),                       # w1 (resident)
            const((1, hidden)),                             # b1
            const((hidden, hidden)),                        # w2
            const((1, hidden)),                             # b2
            const((hidden, out_p)),                         # w3 (lane-padded)
            const((1, out_p)),                              # b3 (lane-padded)
        ],
        out_specs=pl.BlockSpec((tb, out_p), lambda i: (i, 0)),
        compiler_params=pltpu.CompilerParams(
            dimension_semantics=("parallel",),       # megacore split on v7x
            vmem_limit_bytes=32 * 1024 * 1024,       # explicit, fits all chips
        ),
    )(x_bf, w1_bf, b1_f, w2_bf, b2_f, w3_bf, b3_p)

    return out[:B, :out_size]


def init_params(key, input_size, output_size, hidden_size):
    """Deterministic synthetic init (shapes match the used nn.Linear layers)."""
    ks = jax.random.split(key, 6)

    def lin(kw, kb, fan_in, fan_out):
        bound = 1.0 / jnp.sqrt(fan_in)
        w = jax.random.uniform(kw, (fan_in, fan_out), jnp.float32, -bound, bound)
        b = jax.random.uniform(kb, (1, fan_out), jnp.float32, -bound, bound)
        return w, b

    w1, b1 = lin(ks[0], ks[1], input_size, hidden_size)
    w2, b2 = lin(ks[2], ks[3], hidden_size, hidden_size)
    w3, b3 = lin(ks[4], ks[5], hidden_size, output_size)
    return {"w1": w1, "b1": b1, "w2": w2, "b2": b2, "w3": w3, "b3": b3}


def actor_ref(x, p):
    """Pure-JAX reference with the same bf16 MXU operand casting."""
    bf = jnp.bfloat16
    h = jnp.tanh(
        jnp.dot(x.astype(bf), p["w1"].astype(bf),
                preferred_element_type=jnp.float32) + p["b1"])
    h = jnp.tanh(
        jnp.dot(h.astype(bf), p["w2"].astype(bf),
                preferred_element_type=jnp.float32) + p["b2"])
    logits = jnp.dot(h.astype(bf), p["w3"].astype(bf),
                     preferred_element_type=jnp.float32) + p["b3"]
    return jax.nn.softmax(logits, axis=-1)


if __name__ == "__main__":
    key = jax.random.PRNGKey(0)
    k_x, k_p = jax.random.split(key)

    batch, input_size, hidden_size, output_size = 4, 16, 128, 4
    x = jax.random.normal(k_x, (batch, input_size), jnp.float32)
    params = init_params(k_p, input_size, output_size, hidden_size)

    out = actor_forward(x, params)
    out = jax.block_until_ready(out)

    ref = actor_ref(x, params)
    assert out.shape == (batch, output_size)
    assert jnp.allclose(jnp.sum(out, axis=-1), 1.0, atol=1e-4), "probs must sum to 1"
    assert jnp.allclose(out, ref, atol=2e-3, rtol=2e-3), "mismatch vs reference"

    print("KERNEL_OK")
</pallas_src>

<mosaic_0001>
module attributes {stable_mosaic.version = 11 : i64} {
  func.func @actor_kernel(%arg0: i32, %arg1: memref<8x16xbf16, #tpu.memory_space<vmem>>, %arg2: memref<16x128xbf16, #tpu.memory_space<vmem>>, %arg3: memref<1x128xf32, #tpu.memory_space<vmem>>, %arg4: memref<128x128xbf16, #tpu.memory_space<vmem>>, %arg5: memref<1x128xf32, #tpu.memory_space<vmem>>, %arg6: memref<128x128xbf16, #tpu.memory_space<vmem>>, %arg7: memref<1x128xf32, #tpu.memory_space<vmem>>, %arg8: memref<8x128xf32, #tpu.memory_space<vmem>>) attributes {dimension_semantics = [#tpu.dimension_semantics<parallel>], iteration_bounds = array<i64: 1>, scalar_prefetch = 0 : i64, scratch_operands = 0 : i64, tpu.core_type = #tpu.core_type<tc>, window_params = [{transform_indices = @transform_0, window_bounds = array<i64: 8, 16>}, {pipeline_mode = #tpu.pipeline_mode<synchronous>, transform_indices = @transform_1, window_bounds = array<i64: 16, 128>}, {pipeline_mode = #tpu.pipeline_mode<synchronous>, transform_indices = @transform_2, window_bounds = array<i64: 1, 128>}, {pipeline_mode = #tpu.pipeline_mode<synchronous>, transform_indices = @transform_3, window_bounds = array<i64: 128, 128>}, {pipeline_mode = #tpu.pipeline_mode<synchronous>, transform_indices = @transform_4, window_bounds = array<i64: 1, 128>}, {pipeline_mode = #tpu.pipeline_mode<synchronous>, transform_indices = @transform_5, window_bounds = array<i64: 128, 128>}, {pipeline_mode = #tpu.pipeline_mode<synchronous>, transform_indices = @transform_6, window_bounds = array<i64: 1, 128>}, {transform_indices = @transform_7, window_bounds = array<i64: 8, 128>}]} {
    %c0 = arith.constant 0 : index
    %c0_0 = arith.constant 0 : index
    %0 = vector.load %arg1[%c0, %c0_0] : memref<8x16xbf16, #tpu.memory_space<vmem>>, vector<8x16xbf16>
    %c0_1 = arith.constant 0 : index
    %c0_2 = arith.constant 0 : index
    %1 = vector.load %arg2[%c0_1, %c0_2] : memref<16x128xbf16, #tpu.memory_space<vmem>>, vector<16x128xbf16>
    %cst = arith.constant dense<0.000000e+00> : vector<8x128xf32>
    %2 = tpu.matmul %0, %1, %cst {dimension_numbers = #tpu.dot_dimension_numbers<[1], [0], [0], [1], [0, 0, 1, 1], [], []>} : vector<8x16xbf16>, vector<16x128xbf16>, vector<8x128xf32> -> vector<8x128xf32>
    %c0_3 = arith.constant 0 : index
    %c0_4 = arith.constant 0 : index
    %3 = vector.load %arg3[%c0_3, %c0_4] : memref<1x128xf32, #tpu.memory_space<vmem>>, vector<1x128xf32>
    %4 = vector.broadcast %3 : vector<1x128xf32> to vector<8x128xf32>
    %5 = arith.addf %2, %4 : vector<8x128xf32>
    %6 = math.tanh %5 : vector<8x128xf32>
    %7 = arith.truncf %6 : vector<8x128xf32> to vector<8x128xbf16>
    %c0_5 = arith.constant 0 : index
    %c0_6 = arith.constant 0 : index
    %8 = vector.load %arg4[%c0_5, %c0_6] : memref<128x128xbf16, #tpu.memory_space<vmem>>, vector<128x128xbf16>
    %cst_7 = arith.constant dense<0.000000e+00> : vector<8x128xf32>
    %9 = tpu.matmul %7, %8, %cst_7 {dimension_numbers = #tpu.dot_dimension_numbers<[1], [0], [0], [1], [0, 0, 1, 1], [], []>} : vector<8x128xbf16>, vector<128x128xbf16>, vector<8x128xf32> -> vector<8x128xf32>
    %c0_8 = arith.constant 0 : index
    %c0_9 = arith.constant 0 : index
    %10 = vector.load %arg5[%c0_8, %c0_9] : memref<1x128xf32, #tpu.memory_space<vmem>>, vector<1x128xf32>
    %11 = vector.broadcast %10 : vector<1x128xf32> to vector<8x128xf32>
    %12 = arith.addf %9, %11 : vector<8x128xf32>
    %13 = math.tanh %12 : vector<8x128xf32>
    %14 = arith.truncf %13 : vector<8x128xf32> to vector<8x128xbf16>
    %c0_10 = arith.constant 0 : index
    %c0_11 = arith.constant 0 : index
    %15 = vector.load %arg6[%c0_10, %c0_11] : memref<128x128xbf16, #tpu.memory_space<vmem>>, vector<128x128xbf16>
    %cst_12 = arith.constant dense<0.000000e+00> : vector<8x128xf32>
    %16 = tpu.matmul %14, %15, %cst_12 {dimension_numbers = #tpu.dot_dimension_numbers<[1], [0], [0], [1], [0, 0, 1, 1], [], []>} : vector<8x128xbf16>, vector<128x128xbf16>, vector<8x128xf32> -> vector<8x128xf32>
    %c0_13 = arith.constant 0 : index
    %c0_14 = arith.constant 0 : index
    %17 = vector.load %arg7[%c0_13, %c0_14] : memref<1x128xf32, #tpu.memory_space<vmem>>, vector<1x128xf32>
    %18 = vector.broadcast %17 : vector<1x128xf32> to vector<8x128xf32>
    %19 = arith.addf %16, %18 : vector<8x128xf32>
    %cst_15 = arith.constant dense<0xFF800000> : vector<8xf32>
    %20 = vector.multi_reduction <maximumf>, %19, %cst_15 [1] : vector<8x128xf32> to vector<8xf32>
    %21 = vector.shape_cast %20 : vector<8xf32> to vector<8x1xf32>
    %22 = vector.broadcast %21 : vector<8x1xf32> to vector<8x128xf32>
    %23 = arith.subf %19, %22 : vector<8x128xf32>
    %24 = math.exp %23 : vector<8x128xf32>
    %cst_16 = arith.constant dense<0.000000e+00> : vector<8xf32>
    %25 = vector.multi_reduction <add>, %24, %cst_16 [1] : vector<8x128xf32> to vector<8xf32>
    %26 = vector.shape_cast %25 : vector<8xf32> to vector<8x1xf32>
    %27 = vector.broadcast %26 : vector<8x1xf32> to vector<8x128xf32>
    %28 = arith.divf %24, %27 : vector<8x128xf32>
    %c0_17 = arith.constant 0 : index
    %c0_18 = arith.constant 0 : index
    %29 = vector.load %arg8[%c0_17, %c0_18] : memref<8x128xf32, #tpu.memory_space<vmem>>, vector<8x128xf32>
    tpu.vector_store %arg8[%c0_17, %c0_18], %28 {strides = array<i32>} : memref<8x128xf32, #tpu.memory_space<vmem>>, vector<8x128xf32>,
    return
  }
  func.func @transform_0(%arg0: i32) -> (i32, i32) {
    %c0_i32 = arith.constant 0 : i32
    %c0_i32_0 = arith.constant 0 : i32
    return %arg0, %c0_i32 : i32, i32
  }
  func.func @transform_1(%arg0: i32) -> (i32, i32) {
    %c0_i32 = arith.constant 0 : i32
    %c0_i32_0 = arith.constant 0 : i32
    %c0_i32_1 = arith.constant 0 : i32
    return %c0_i32, %c0_i32_0 : i32, i32
  }
  func.func @transform_2(%arg0: i32) -> (i32, i32) {
    %c0_i32 = arith.constant 0 : i32
    %c0_i32_0 = arith.constant 0 : i32
    %c0_i32_1 = arith.constant 0 : i32
    return %c0_i32, %c0_i32_0 : i32, i32
  }
  func.func @transform_3(%arg0: i32) -> (i32, i32) {
    %c0_i32 = arith.constant 0 : i32
    %c0_i32_0 = arith.constant 0 : i32
    %c0_i32_1 = arith.constant 0 : i32
    return %c0_i32, %c0_i32_0 : i32, i32
  }
  func.func @transform_4(%arg0: i32) -> (i32, i32) {
    %c0_i32 = arith.constant 0 : i32
    %c0_i32_0 = arith.constant 0 : i32
    %c0_i32_1 = arith.constant 0 : i32
    return %c0_i32, %c0_i32_0 : i32, i32
  }
  func.func @transform_5(%arg0: i32) -> (i32, i32) {
    %c0_i32 = arith.constant 0 : i32
    %c0_i32_0 = arith.constant 0 : i32
    %c0_i32_1 = arith.constant 0 : i32
    return %c0_i32, %c0_i32_0 : i32, i32
  }
  func.func @transform_6(%arg0: i32) -> (i32, i32) {
    %c0_i32 = arith.constant 0 : i32
    %c0_i32_0 = arith.constant 0 : i32
    %c0_i32_1 = arith.constant 0 : i32
    return %c0_i32, %c0_i32_0 : i32, i32
  }
  func.func @transform_7(%arg0: i32) -> (i32, i32) {
    %c0_i32 = arith.constant 0 : i32
    %c0_i32_0 = arith.constant 0 : i32
    return %arg0, %c0_i32 : i32, i32
  }
}

</mosaic_0001>

<bundles_post_ra>
// kernel: tpu_custom_call.1
= control target key start
LH: loop header
LB: loop body
LE: loop exit
PB: predicated region body
PF: predicated region fallthrough
CT: control target
= control target key end

     0   :  { %12 = vsyncpa [#allocation3], 0  ;;  %s780_s0 = inlined_call_operand.hbm [shape: bf16[8,16], index: 0, kind: input, shape index: {}]   ;;  %s781_s1 = inlined_call_operand.hbm [shape: bf16[16,128], index: 1, kind: input, shape index: {}]   ;;  %s782_s2 = inlined_call_operand.vmem [shape: f32[1,128], index: 2, kind: input, shape index: {}]   ;;  %s783_s3 = inlined_call_operand.hbm [shape: bf16[128,128], index: 3, kind: input, shape index: {}]   ;;  %s784_s4 = inlined_call_operand.vmem [shape: f32[1,128], index: 4, kind: input, shape index: {}]   ;;  %s785_s5 = inlined_call_operand.hbm [shape: bf16[128,128], index: 5, kind: input, shape index: {}]   ;;  %s786_s6 = inlined_call_operand.vmem [shape: f32[1,128], index: 6, kind: input, shape index: {}]   ;;  %s787_s7 = inlined_call_operand.hbm [shape: f32[8,128], index: 7, kind: output, shape index: {}]  }
   0x1   :  { %13 = vsyncpa [#allocation6], 0 }
   0x2   :  { %14 = vsyncpa [#allocation9], 0 }
   0x3   :  { %15 = vsyncpa [#allocation4], 0  ;;  %s633_s24 = smov [#allocation5]   ;;  %s515_s28 = scalar_lea.hbm %s781_s1, 128 }
   0x4   :  { %s31_s25 = sshll.u32 %s633_s24, 4  ;;  %p516_p0 = scmp.ne.s32.totalorder %s781_s1, %s515_s28  ;;  %s32_s25 = int_to_ptr.vmem [resolvable:$true] %s31_s25 }
   0x5   :  { %p519_p1 = scmp.lt.u32.totalorder %s515_s28, %s781_s1 }
   0x7   :  { %p521_p2 = pnand %p519_p1, %p516_p0 }
   0x9   :  { %524 = shalt.err (!%p521_p2)
}
   0xa   :  { %s525_s10 = scalar_lea.vmem %s32_s25, 128  ;;  %p530_p4 = scmp.lt.s32.totalorder %s32_s25, %s32_s25 }
   0xb   :  { %p526_p3 = scmp.ne.s32.totalorder %s32_s25, %s525_s10  ;;  %p531_p5 = scmp.lt.s32.totalorder %s525_s10, %s525_s10 }
   0xd   :  { %p532_p6 = por %p531_p5, %p530_p4 }
   0xf   :  { %p533_p7 = pnand %p532_p6, %p526_p3 }
  0x11   :  { %536 = shalt.err (!%p533_p7)
}
  0x12   :  { %s634_s11 = smov 64   ;;  %s635_s12 = smov 4  }
  0x13   :  { %37 = dma.hbm_to_vmem [thread:$0]  %s781_s1, 128, %s32_s25, [#allocation6], %s634_s11, %s634_s11, %s635_s12  }
  0x14   :  { %s636_s15 = smov [#allocation2]   ;;  %s637_s17 = smov [#allocation7]  }
  0x15   :  { %s22_s16 = sshll.u32 %s636_s15, 4  ;;  %s45_s18 = sshll.u32 %s637_s17, 4  ;;  %s23_s16 = int_to_ptr.vmem [resolvable:$true] %s22_s16  ;;  %s46_s18 = int_to_ptr.vmem [resolvable:$true] %s45_s18 }
  0x16   :  { %s537_s21 = scalar_lea.hbm %s780_s0, 64 }
  0x17   :  { %p538_p8 = scmp.ne.s32.totalorder %s780_s0, %s537_s21  ;;  %p541_p9 = scmp.lt.u32.totalorder %s537_s21, %s780_s0 }
  0x19   :  { %p543_p10 = pnand %p541_p9, %p538_p8 }
  0x1b   :  { %546 = shalt.err (!%p543_p10)
}
  0x1c   :  { %s547_s1 = scalar_lea.vmem %s23_s16, 64  ;;  %p552_p12 = scmp.lt.s32.totalorder %s23_s16, %s23_s16 }
  0x1d   :  { %p548_p11 = scmp.ne.s32.totalorder %s23_s16, %s547_s1  ;;  %p553_p13 = scmp.lt.s32.totalorder %s547_s1, %s547_s1 }
  0x1f   :  { %p554_p0 = por %p553_p13, %p552_p12 }
  0x21   :  { %p555_p1 = pnand %p554_p0, %p548_p11 }
  0x23   :  { %558 = shalt.err (!%p555_p1)
}
  0x24   :  { %25 = dma.hbm_to_vmem [thread:$0]  %s780_s0, 64, %s23_s16, [#allocation3]  }
  0x25   :  { %s559_s30 = scalar_lea.hbm %s783_s3, 1024 }
  0x26   :  { %p560_p2 = scmp.ne.s32.totalorder %s783_s3, %s559_s30  ;;  %p563_p3 = scmp.lt.u32.totalorder %s559_s30, %s783_s3 }
  0x28   :  { %p565_p4 = pnand %p563_p3, %p560_p2 }
  0x2a   :  { %568 = shalt.err (!%p565_p4)
}
  0x2b   :  { %s569_s14 = scalar_lea.vmem %s46_s18, 1024  ;;  %p574_p6 = scmp.lt.s32.totalorder %s46_s18, %s46_s18 }
  0x2c   :  { %p570_p5 = scmp.ne.s32.totalorder %s46_s18, %s569_s14  ;;  %p575_p7 = scmp.lt.s32.totalorder %s569_s14, %s569_s14 }
  0x2e   :  { %p576_p8 = por %p575_p7, %p574_p6 }
  0x30   :  { %p577_p9 = pnand %p576_p8, %p570_p5 }
  0x32   :  { %580 = shalt.err (!%p577_p9)
}
  0x33   :  { %51 = dma.hbm_to_vmem [thread:$0]  %s783_s3, 1024, %s46_s18, [#allocation6], %s634_s11, %s634_s11, %s635_s12  }
  0x34   :  { %s638_s16 = smov [#allocation8]   ;;  %s581_s21 = scalar_lea.hbm %s785_s5, 1024 }
  0x35   :  { %s59_s17 = sshll.u32 %s638_s16, 4  ;;  %p582_p10 = scmp.ne.s32.totalorder %s785_s5, %s581_s21  ;;  %s60_s17 = int_to_ptr.vmem [resolvable:$true] %s59_s17 }
  0x36   :  { %p585_p11 = scmp.lt.u32.totalorder %s581_s21, %s785_s5 }
  0x38   :  { %p587_p12 = pnand %p585_p11, %p582_p10 }
  0x3a   :  { %590 = shalt.err (!%p587_p12)
}
  0x3b   :  { %s591_s1 = scalar_lea.vmem %s60_s17, 1024  ;;  %p596_p0 = scmp.lt.s32.totalorder %s60_s17, %s60_s17 }
  0x3c   :  { %p592_p13 = scmp.ne.s32.totalorder %s60_s17, %s591_s1  ;;  %p597_p1 = scmp.lt.s32.totalorder %s591_s1, %s591_s1 }
  0x3e   :  { %p598_p2 = por %p597_p1, %p596_p0 }
  0x40   :  { %p599_p3 = pnand %p598_p2, %p592_p13 }
  0x42   :  { %602 = shalt.err (!%p599_p3)
}
  0x43   :  { %65 = dma.hbm_to_vmem [thread:$0]  %s785_s5, 1024, %s60_s17, [#allocation9], %s634_s11, %s634_s11, %s635_s12  }
  0x44   :  { %625 = dma.done.wait [#allocation3], 64  }
  0x45   :  { %626 = vsyncadd [#allocation3], 4294967232 }
  0x46   :  { %627 = dma.done.wait [#allocation6], 1152  }
  0x47   :  { %628 = vsyncadd [#allocation6], 4294966144 }
  0x48   :  { %629 = dma.done.wait [#allocation9], 1024  }
  0x49   :  { %630 = vsyncadd [#allocation9], 4294966272  ;;  %v639_v0 = vmov 0.0   ;;  %vm640_vm0 = vmmov 0   ;;  %v490_v1 = vld [vmem:[#allocation5] sm:$0xff]   ;;  %vm97_vm1 = vcmask 130048  }
  0x4a   :  { %435 = vmatprep.subr.bf16.mxu0 %v639_v0  ;;  %437 = vmatprep.mubr.msk.bf16.mxu0 %vm640_vm0, %v639_v0  ;;  %v81_v2 = vld [vmem:[#allocation2] sm:$0xf]  ;;  %v491_v3 = vld [vmem:[#allocation7] sm:$0xff]   ;;  %v492_v4 = vld [vmem:[#allocation7 + $0x8] sm:$0xff]  }
  0x4b   :  { %441 = vmatprep.subr.bf16.mxu1 %v639_v0  ;;  %457 = vmatprep.mubr.msk.bf16.mxu1 %vm640_vm0, %v639_v0  ;;  %v493_v5 = vld [vmem:[#allocation7 + $0x10] sm:$0xff]   ;;  %v494_v6 = vld [vmem:[#allocation7 + $0x18] sm:$0xff]   ;;  %v495_v7 = vld [vmem:[#allocation7 + $0x20] sm:$0xff]  }
  0x4c   :  { %436 = vmatpush3.bf16.msra.mxu0 %v490_v1  ;;  %442 = vmatpush3.bf16.msra.mxu1 %v491_v3  ;;  %v496_v8 = vld [vmem:[#allocation7 + $0x28] sm:$0xff]   ;;  %v497_v9 = vld [vmem:[#allocation7 + $0x30] sm:$0xff]   ;;  %v498_v10 = vld [vmem:[#allocation7 + $0x38] sm:$0xff]  }
  0x4d   :  { %461 = vmatprep.subr.bf16.mxu0 %v639_v0  ;;  %443 = vmatprep.subr.bf16.mxu1 %v639_v0  ;;  %v499_v11 = vld [vmem:[#allocation8] sm:$0xff]   ;;  %v500_v12 = vld [vmem:[#allocation8 + $0x8] sm:$0xff]   ;;  %v501_v13 = vld [vmem:[#allocation8 + $0x10] sm:$0xff]  }
  0x4e   :  { %v502_v14 = vld [vmem:[#allocation8 + $0x18] sm:$0xff]   ;;  %v394_v15 = vld [vmem:[%s782_s2] ss:$0 sm:$0xff]  ;;  %v503_v23 = vld [vmem:[#allocation8 + $0x20] sm:$0xff]  }
  0x4f   :  { %438 = vmatmul.mubr.msk.bf16.vlgmr.msra.gmra.mrb[0].mxu0 %vm97_vm1, %v81_v2  ;;  %v504_v24 = vld [vmem:[#allocation8 + $0x28] sm:$0xff]   ;;  %v505_v25 = vld [vmem:[#allocation8 + $0x30] sm:$0xff]   ;;  %v506_v26 = vld [vmem:[#allocation8 + $0x38] sm:$0xff]  }
  0x50   :  { %477 = vmatprep.mubr.msk.bf16.mxu0 %vm640_vm0, %v639_v0  ;;  %444 = vmatpush3.bf16.msra.mxu1 %v492_v4  ;;  %v397_v27 = vld [vmem:[%s784_s4] ss:$0 sm:$0xff]  ;;  %s641_s4 = smov [#allocation10]  }
  0x51   :  { %445 = vmatprep.subr.bf16.mxu1 %v639_v0  ;;  %462 = vmatpush3.bf16.msra.mxu0 %v499_v11  ;;  %v406_v35 = vld [vmem:[%s786_s6] ss:$0 sm:$0xff]  ;;  %s383_s28 = sshll.u32 %s641_s4, 4  ;;  %s384_s28 = int_to_ptr.vmem [resolvable:$true] %s383_s28 }
  0x52   :  { %463 = vmatprep.subr.bf16.mxu0 %v639_v0  ;;  %s603_s6 = scalar_lea.vmem %s384_s28, 128  ;;  %p608_p5 = scmp.lt.s32.totalorder %s384_s28, %s384_s28 }
  0x53   :  { %p604_p4 = scmp.ne.s32.totalorder %s384_s28, %s603_s6  ;;  %p609_p6 = scmp.lt.s32.totalorder %s603_s6, %s603_s6 }
  0x54   :  { %446 = vmatpush3.bf16.msra.mxu1 %v493_v5 }
  0x55   :  { %447 = vmatprep.subr.bf16.mxu1 %v639_v0  ;;  %464 = vmatpush3.bf16.msra.mxu0 %v500_v12  ;;  %p610_p7 = por %p609_p6, %p608_p5 }
  0x56   :  { %465 = vmatprep.subr.bf16.mxu0 %v639_v0 }
  0x57   :  { %p611_p8 = pnand %p610_p7, %p604_p4 }
  0x58   :  { %448 = vmatpush3.bf16.msra.mxu1 %v494_v6 }
  0x59   :  { %449 = vmatprep.subr.bf16.mxu1 %v639_v0  ;;  %466 = vmatpush3.bf16.msra.mxu0 %v501_v13 }
  0x5a   :  { %467 = vmatprep.subr.bf16.mxu0 %v639_v0 }
  0x5c   :  { %450 = vmatpush3.bf16.msra.mxu1 %v495_v7 }
  0x5d   :  { %451 = vmatprep.subr.bf16.mxu1 %v639_v0  ;;  %468 = vmatpush3.bf16.msra.mxu0 %v502_v14 }
  0x5e   :  { %469 = vmatprep.subr.bf16.mxu0 %v639_v0 }
  0x60   :  { %452 = vmatpush3.bf16.msra.mxu1 %v496_v8 }
  0x61   :  { %453 = vmatprep.subr.bf16.mxu1 %v639_v0  ;;  %470 = vmatpush3.bf16.msra.mxu0 %v503_v23 }
  0x62   :  { %471 = vmatprep.subr.bf16.mxu0 %v639_v0 }
  0x64   :  { %454 = vmatpush3.bf16.msra.mxu1 %v497_v9 }
  0x65   :  { %455 = vmatprep.subr.bf16.mxu1 %v639_v0  ;;  %472 = vmatpush3.bf16.msra.mxu0 %v504_v24 }
  0x66   :  { %473 = vmatprep.subr.bf16.mxu0 %v639_v0 }
  0x68   :  { %456 = vmatpush3.bf16.msra.mxu1 %v498_v10 }
  0x69   :  { %474 = vmatpush3.bf16.msra.mxu0 %v505_v25 }
  0x6a   :  { %475 = vmatprep.subr.bf16.mxu0 %v639_v0 }
  0x6d   :  { %476 = vmatpush3.bf16.msra.mxu0 %v506_v26 }
 0x122   :  { %v135_v16 = vpop.f32.mrb[0].mxu0 }
 0x123   :  { %v136_v17 = vadd.f32 %v394_v15, %v135_v16  ;;  %v439_v18 = vpop.f32.mrb[1].mxu0 }
 0x124   :  { %v138_v19 = vpop.f32.mrb[2].mxu0 }
 0x125   :  { %507 = vtanh.f32 %v136_v17  ;;  %v440_v20 = vpop.f32.mrb[3].mxu0 }
 0x12f   :  { %v508_v21 = vpop.eup %507 }
 0x130   :  { %v142_v22 = vpack.c.bf16 %v508_v21, %v508_v21 }
 0x132   :  { %458 = vmatmul.mubr.bf16.vlgmr.msra.gmra.mrb[0].mxu1 %v142_v22 }
 0x205   :  { %v248_v28 = vpop.f32.mrb[0].mxu1 }
 0x206   :  { %v249_v29 = vadd.f32 %v397_v27, %v248_v28  ;;  %v459_v30 = vpop.f32.mrb[1].mxu1 }
 0x207   :  { %v251_v31 = vpop.f32.mrb[2].mxu1 }
 0x208   :  { %509 = vtanh.f32 %v249_v29  ;;  %v460_v32 = vpop.f32.mrb[3].mxu1 }
 0x212   :  { %v510_v33 = vpop.eup %509 }
 0x213   :  { %v255_v34 = vpack.c.bf16 %v510_v33, %v510_v33 }
 0x215   :  { %478 = vmatmul.mubr.bf16.vlgmr.msra.gmra.mrb[4].mxu0 %v255_v34 }
 0x2e8   :  { %v361_v36 = vpop.f32.mrb[4].mxu0 }
 0x2e9   :  { %v362_v37 = vadd.f32 %v406_v35, %v361_v36  ;;  %v479_v38 = vpop.f32.mrb[5].mxu0 }
 0x2ea   :  { %v364_v39 = vpop.f32.mrb[6].mxu0 }
 0x2eb   :  { %367 = vmax.xlane.f32.xlu0 %v362_v37  ;;  %v480_v40 = vpop.f32.mrb[7].mxu0 }
 0x378   :  { %v368_v41 = vpop.xlane.xlu0 %367 }
 0x379   :  { %v369_v42 = vsub.f32 %v362_v37, %v368_v41 }
 0x37b   :  { %v370_v43 = vmul.f32 1.442695, %v369_v42 }
 0x37d   :  { %511 = vpow2.f32 %v370_v43 }
 0x387   :  { %v512_v44 = vpop.eup %511 }
 0x388   :  { %372 = vadd.xlane.f32.xlu0 %v512_v44 }
 0x415   :  { %v373_v45 = vpop.xlane.xlu0 %372 }
 0x416   :  { %513 = vrcp.f32 %v373_v45 }
 0x420   :  { %v514_v46 = vpop.eup %513 }
 0x421   :  { %v375_v47 = vmul.f32 %v514_v46, %v512_v44 }
 0x423   :  { %376 = vst [vmem:[#allocation10] sm:$0xff] %v375_v47 }
 0x424   :  { %614 = shalt.err (!%p611_p8)
}
 0x425   :  { %s615_s8 = scalar_lea.hbm %s787_s7, 128 }
 0x426   :  { %p616_p9 = scmp.ne.s32.totalorder %s787_s7, %s615_s8  ;;  %p619_p10 = scmp.lt.u32.totalorder %s615_s8, %s787_s7 }
 0x428   :  { %p621_p11 = pnand %p619_p10, %p616_p9 }
 0x42a   :  { %624 = shalt.err (!%p621_p11)
}
 0x42b   :  { %386 = dma.vmem_to_hbm [thread:$0]  %s384_s28, 128, %s787_s7, [#allocation4]  }
 0x42c   :  { %631 = dma.done.wait [#allocation4], 128  }
 0x42d   :  { %632 = vsyncadd [#allocation4], 4294967168 }
 0x42e   :  { %390 = vsyncpa [#allocation3], 1 }
 0x42f   :  { %391 = vsyncpa [#allocation6], 1 }
 0x430   :  { %392 = vsyncpa [#allocation9], 1 }
 0x431   :  { %393 = vsyncpa [#allocation4], 1 }

</bundles_post_ra>
